<compile_context>
chip_gen: v6e
topology: v6e:2x2x1
jax: 0.10.0
libtpu: 0.0.40
codegen_flags: <defaults>
</compile_context>

<pallas_src>
import functools
import math

import jax
import jax.numpy as jnp
from jax.experimental import pallas as pl
from jax.experimental.pallas import tpu as pltpu


def _rmlm_kernel(f_ref, g_ref, rf_ref, rg_ref, o_ref, *, scale):
    rf = rf_ref[...]
    rg = rg_ref[...]
    # Cast activations to the weight dtype (no-op for f32 weights; enables the
    # native bf16 MXU path when the projection matrices are stored in bf16).
    f = f_ref[...].astype(rf.dtype)
    g = g_ref[...].astype(rg.dtype)
    fr = jnp.dot(f, rf, preferred_element_type=jnp.float32)   # MXU
    gr = jnp.dot(g, rg, preferred_element_type=jnp.float32)   # MXU
    o_ref[...] = (fr * gr * scale).astype(o_ref.dtype)         # VPU (hidden)


def _pick_tile_n(N, F, C, tile_b, rf_bytes, rg_bytes, f_bytes, g_bytes,
                 out_bytes, vmem_budget_bytes):
    """Largest tile_n (multiple of 128, dividing N) that fits the VMEM budget,
    preferring >= 2 grid steps over N (keeps both v7x TensorCores busy)."""
    candidates = [c for c in (1024, 512, 256, 128) if c <= N and N % c == 0]
    if not candidates:
        # N smaller than 128 (or not a multiple): use the full dimension, which
        # is always a legal block shape.
        return N

    def fits(tn):
        per_step = (
            2 * F * tn * rf_bytes          # double-buffered Rf column tile
            + 2 * C * tn * rg_bytes        # double-buffered Rg column tile
            + 2 * tile_b * F * f_bytes     # double-buffered f block
            + 2 * tile_b * C * g_bytes     # double-buffered g block
            + 2 * tile_b * tn * out_bytes  # double-buffered output block
        )
        return per_step <= vmem_budget_bytes

    for tn in candidates:
        if fits(tn) and N // tn >= 2:
            return tn
    for tn in candidates:
        if fits(tn):
            return tn
    return candidates[-1]


def randomized_multilinear_map(f, g, Rf, Rg, *, tile_n=None, tile_b=None,
                               out_dtype=jnp.float32,
                               vmem_budget_bytes=40 * 1024 * 1024):
    """out = (f @ Rf) * (g @ Rg) / sqrt(output_dim) in one Pallas kernel."""
    B, F = f.shape
    Bg, C = g.shape
    assert B == Bg
    Ff, N = Rf.shape
    Cg, Ng = Rg.shape
    assert Ff == F and Cg == C and Ng == N

    def _isz(x):
        return jnp.dtype(x.dtype).itemsize

    out_isz = jnp.dtype(out_dtype).itemsize

    # ---- batch tiling: full batch unless it is large ----
    if tile_b is None:
        tile_b = B
        if B > 256:
            if B % 256 == 0:
                tile_b = 256
            elif B % 128 == 0:
                tile_b = 128
    assert B % tile_b == 0, "batch tile must divide B"

    # ---- output-column tiling: biggest tile that fits the VMEM budget ----
    if tile_n is None:
        tile_n = _pick_tile_n(N, F, C, tile_b, _isz(Rf), _isz(Rg),
                              _isz(f), _isz(g), out_isz, vmem_budget_bytes)
    assert N % tile_n == 0, "output_dim must be a multiple of tile_n"

    # ---- explicit VMEM limit (raise v5e's 16 MiB default; stay < v7x 64 MiB) ----
    per_step_bytes = (
        2 * F * tile_n * _isz(Rf)
        + 2 * C * tile_n * _isz(Rg)
        + 2 * tile_b * F * _isz(f)
        + 2 * tile_b * C * _isz(g)
        + 2 * tile_b * tile_n * out_isz
    )
    vmem_limit = int(min(max(per_step_bytes * 3 // 2, 16 * 1024 * 1024),
                         56 * 1024 * 1024))

    scale = 1.0 / math.sqrt(float(N))
    kernel = functools.partial(_rmlm_kernel, scale=scale)

    grid = (B // tile_b, N // tile_n)

    cost = pl.CostEstimate(
        flops=2 * B * (F + C) * N,
        transcendentals=0,
        bytes_accessed=(f.size * _isz(f) + g.size * _isz(g)
                        + Rf.size * _isz(Rf) + Rg.size * _isz(Rg)
                        + B * N * out_isz),
    )

    return pl.pallas_call(
        kernel,
        out_shape=jax.ShapeDtypeStruct((B, N), out_dtype),
        grid_spec=pltpu.PrefetchScalarGridSpec(
            num_scalar_prefetch=0,
            grid=grid,
            in_specs=[
                pl.BlockSpec((tile_b, F), lambda i, j: (i, 0)),       # f rows
                pl.BlockSpec((tile_b, C), lambda i, j: (i, 0)),       # g rows
                pl.BlockSpec((F, tile_n), lambda i, j: (0, j)),       # Rf cols
                pl.BlockSpec((C, tile_n), lambda i, j: (0, j)),       # Rg cols
            ],
            out_specs=pl.BlockSpec((tile_b, tile_n), lambda i, j: (i, j)),
        ),
        compiler_params=pltpu.CompilerParams(
            dimension_semantics=("parallel", "parallel"),
            vmem_limit_bytes=vmem_limit,
        ),
        cost_estimate=cost,
    )(f, g, Rf, Rg)


if __name__ == "__main__":
    # Small, forward-consistent shapes.
    B = 8              # batch
    features_dim = 32
    num_classes = 16
    output_dim = 256   # module default is 1024; 256 keeps the example small

    key = jax.random.PRNGKey(0)
    kf, kg, krf, krg = jax.random.split(key, 4)

    # Deterministic "randn" parameter init (as in __init__).
    Rf = jax.random.normal(krf, (features_dim, output_dim), dtype=jnp.float32)
    Rg = jax.random.normal(krg, (num_classes, output_dim), dtype=jnp.float32)

    # Example inputs: features f and (softmax-like) class scores g.
    f = jax.random.normal(kf, (B, features_dim), dtype=jnp.float32)
    g = jax.nn.softmax(jax.random.normal(kg, (B, num_classes), dtype=jnp.float32),
                       axis=-1)

    # --- float32 path (exact PyTorch semantics) ---
    out = randomized_multilinear_map(f, g, Rf, Rg)
    out = jax.block_until_ready(out)

    ref = (f @ Rf) * (g @ Rg) / jnp.sqrt(float(output_dim))
    assert out.shape == (B, output_dim)
    assert jnp.allclose(out, ref, atol=1e-4, rtol=1e-4)

    # --- bf16 projection-matrix path (halves HBM traffic on Rf/Rg streams) ---
    out_bf = randomized_multilinear_map(f, g,
                                        Rf.astype(jnp.bfloat16),
                                        Rg.astype(jnp.bfloat16))
    out_bf = jax.block_until_ready(out_bf)
    assert out_bf.shape == (B, output_dim)
    assert jnp.allclose(out_bf, ref, atol=5e-2, rtol=5e-2)

    print("KERNEL_OK")
</pallas_src>

<mosaic_0001>
module attributes {stable_mosaic.version = 11 : i64} {
  func.func @_rmlm_kernel(%arg0: i32, %arg1: i32, %arg2: memref<8x32xf32, #tpu.memory_space<vmem>>, %arg3: memref<8x16xf32, #tpu.memory_space<vmem>>, %arg4: memref<32x128xf32, #tpu.memory_space<vmem>>, %arg5: memref<16x128xf32, #tpu.memory_space<vmem>>, %arg6: memref<8x128xf32, #tpu.memory_space<vmem>>) attributes {dimension_semantics = [#tpu.dimension_semantics<parallel>, #tpu.dimension_semantics<parallel>], iteration_bounds = array<i64: 1, 2>, scalar_prefetch = 0 : i64, scratch_operands = 0 : i64, tpu.core_type = #tpu.core_type<tc>, window_params = [{transform_indices = @transform_0, window_bounds = array<i64: 8, 32>}, {transform_indices = @transform_1, window_bounds = array<i64: 8, 16>}, {transform_indices = @transform_2, window_bounds = array<i64: 32, 128>}, {transform_indices = @transform_3, window_bounds = array<i64: 16, 128>}, {transform_indices = @transform_4, window_bounds = array<i64: 8, 128>}]} {
    %c0 = arith.constant 0 : index
    %c0_0 = arith.constant 0 : index
    %0 = vector.load %arg4[%c0, %c0_0] : memref<32x128xf32, #tpu.memory_space<vmem>>, vector<32x128xf32>
    %c0_1 = arith.constant 0 : index
    %c0_2 = arith.constant 0 : index
    %1 = vector.load %arg5[%c0_1, %c0_2] : memref<16x128xf32, #tpu.memory_space<vmem>>, vector<16x128xf32>
    %c0_3 = arith.constant 0 : index
    %c0_4 = arith.constant 0 : index
    %2 = vector.load %arg2[%c0_3, %c0_4] : memref<8x32xf32, #tpu.memory_space<vmem>>, vector<8x32xf32>
    %c0_5 = arith.constant 0 : index
    %c0_6 = arith.constant 0 : index
    %3 = vector.load %arg3[%c0_5, %c0_6] : memref<8x16xf32, #tpu.memory_space<vmem>>, vector<8x16xf32>
    %cst = arith.constant dense<0.000000e+00> : vector<8x128xf32>
    %4 = tpu.matmul %2, %0, %cst {dimension_numbers = #tpu.dot_dimension_numbers<[1], [0], [0], [1], [0, 0, 1, 1], [], []>} : vector<8x32xf32>, vector<32x128xf32>, vector<8x128xf32> -> vector<8x128xf32>
    %cst_7 = arith.constant dense<0.000000e+00> : vector<8x128xf32>
    %5 = tpu.matmul %3, %1, %cst_7 {dimension_numbers = #tpu.dot_dimension_numbers<[1], [0], [0], [1], [0, 0, 1, 1], [], []>} : vector<8x16xf32>, vector<16x128xf32>, vector<8x128xf32> -> vector<8x128xf32>
    %6 = arith.mulf %4, %5 : vector<8x128xf32>
    %cst_8 = arith.constant 6.250000e-02 : f32
    %7 = vector.broadcast %cst_8 : f32 to vector<8x128xf32>
    %8 = arith.mulf %6, %7 : vector<8x128xf32>
    %c0_9 = arith.constant 0 : index
    %c0_10 = arith.constant 0 : index
    %9 = vector.load %arg6[%c0_9, %c0_10] : memref<8x128xf32, #tpu.memory_space<vmem>>, vector<8x128xf32>
    tpu.vector_store %arg6[%c0_9, %c0_10], %8 {strides = array<i32>} : memref<8x128xf32, #tpu.memory_space<vmem>>, vector<8x128xf32>,
    return
  }
  func.func @transform_0(%arg0: i32, %arg1: i32) -> (i32, i32) {
    %c0_i32 = arith.constant 0 : i32
    %c0_i32_0 = arith.constant 0 : i32
    return %arg0, %c0_i32 : i32, i32
  }
  func.func @transform_1(%arg0: i32, %arg1: i32) -> (i32, i32) {
    %c0_i32 = arith.constant 0 : i32
    %c0_i32_0 = arith.constant 0 : i32
    return %arg0, %c0_i32 : i32, i32
  }
  func.func @transform_2(%arg0: i32, %arg1: i32) -> (i32, i32) {
    %c0_i32 = arith.constant 0 : i32
    %c0_i32_0 = arith.constant 0 : i32
    return %c0_i32, %arg1 : i32, i32
  }
  func.func @transform_3(%arg0: i32, %arg1: i32) -> (i32, i32) {
    %c0_i32 = arith.constant 0 : i32
    %c0_i32_0 = arith.constant 0 : i32
    return %c0_i32, %arg1 : i32, i32
  }
  func.func @transform_4(%arg0: i32, %arg1: i32) -> (i32, i32) {
    %c0_i32 = arith.constant 0 : i32
    return %arg0, %arg1 : i32, i32
  }
}

</mosaic_0001>

<bundles_post_ra>
// kernel: tpu_custom_call.1
= control target key start
LH: loop header
LB: loop body
LE: loop exit
PB: predicated region body
PF: predicated region fallthrough
CT: control target
= control target key end

     0   :  { %s1184_s0 = inlined_call_operand.hbm [shape: f32[8,32], index: 0, kind: input, shape index: {}]   ;;  %s1185_s1 = inlined_call_operand.hbm [shape: f32[8,16], index: 1, kind: input, shape index: {}]   ;;  %s1186_s2 = inlined_call_operand.hbm [shape: f32[32,256], index: 2, kind: input, shape index: {}]   ;;  %s1187_s3 = inlined_call_operand.hbm [shape: f32[16,256], index: 3, kind: input, shape index: {}]   ;;  %s1188_s4 = inlined_call_operand.hbm [shape: f32[8,256], index: 4, kind: output, shape index: {}]  }
   0x1   :  { %1194 = sst [smem:[#allocation15_spill]] %s1184_s0 }
   0x2   :  { %9 = vsyncpa [#allocation3], 0 }
   0x3   :  { %10 = vsyncpa [#allocation6], 0 }
   0x4   :  { %11 = vsyncpa [#allocation4], 0 }
   0x5   :  { %13 = vsyncpa [#allocation4 + $0x1], 0  ;;  %s974_s15 = smov 0   ;;  %s976_s16 = smov 0  }
   0x6   :  { %s978_s17 = smov 0   ;;  %s980_s18 = smov 0  }
   0x7   :  { %s982_s19 = smov 0   ;;  %s984_s20 = smov 0  }
   0x8 LB: > { %s1005_s21 = sadd.s32 4294967295, %s937_s20   ;;  %s601_s22 = sadd.s32 4294967294, %s937_s20   ;;  %s937_s20 = sphi %s984_s20, %s19_s20   ;;  %s933_s19 = sphi %s982_s19, %s1215_s19   ;;  %s929_s18 = sphi %s980_s18, %s1214_s18   ;;  %s925_s17 = sphi %s978_s17, %s1213_s17   ;;  %s921_s16 = sphi %s976_s16, %s1212_s16   ;;  %s917_s15 = sphi %s974_s15, %s1211_s15  }
   0x9   : > { %s90_s23 = sadd.s32 1, %s925_s17  ;;  %p97_p0 = scmp.ne.s32.totalorder %s925_s17, %s921_s16 }
   0xa   : > { %p98_p1 = scmp.eq.s32.totalorder %s937_s20, 0  ;;  %p103_p2 = scmp.ne.s32.totalorder %s921_s16, %s917_s15 }
   0xb   : > { %p104_p3 = scmp.eq.s32.totalorder %s1005_s21, 0  ;;  %p155_p4 = scmp.eq.s32.totalorder %s1005_s21, 1 }
   0xc   : > { %p1016_p5 = por %p98_p1, %p97_p0  ;;  %p161_p6 = scmp.eq.s32.totalorder %s601_s22, 1 }
   0xd   : > { %p1022_p7 = por %p104_p3, %p103_p2  ;;  %p1026_p8 = por %p155_p4, %p97_p0 }
   0xe   : > { %p1030_p9 = por %p161_p6, %p103_p2  ;;  %p602_p10 = scmp.ge.s32.totalorder %s937_s20, 1 }
   0xf   : > { %s1197_s26 = scalar_select %p1026_p8, 1, 0 }
  0x10   : > { %s1198_s27 = scalar_select %p1030_p9, 1, 0 }
  0x11   : > { %p168_p11 = scmp.lt.s32.totalorder %s937_s20, 3  ;;  %s939_s29 = smov [#allocation2]  }
  0x12   : > { %s183_s30 = sshll.u32 %s939_s29, 4  ;;  %p682_p1 = scmp.lt.s32.totalorder %s937_s20, 2  ;;  %s184_s30 = int_to_ptr.vmem [resolvable:$true] %s183_s30 }
  0x13   : > { %p1037_p13 = pnand %p602_p10, %p168_p11  ;;  %s28_s7 = sadd.s32 1, %s933_s19 }
  0x14   : > { %p1046_p4 = pnand %p682_p1, %p1016_p5  ;;  %p29_p6 = scmp.ge.s32.totalorder %s28_s7, 2 }
  0x15   : > { %p662_p0 = pneg %p1037_p13  ;;  %s207_s8 = sand.u32 1, %s937_s20  }
  0x16   : > { %s752_s9 = scalar_lea.vmem %s184_s30, 128  ;;  %p760_p12 = scmp.lt.s32.totalorder %s184_s30, %s184_s30 }
  0x17   : > { %p1052_p2 = pnand %p662_p0, %p104_p3  ;;  %p753_p11 = scmp.ne.s32.totalorder %s184_s30, %s752_s9 }
  0x18   : > { %p761_p9 = scmp.lt.s32.totalorder %s752_s9, %s752_s9 }
  0x19   : > { %p743_p10 = pneg %p1052_p2 }
  0x1a   : > { %p762_p8 = por %p761_p9, %p760_p12 }
  0x1b   : > { %p755_p5 = pnand %p753_p11, %p743_p10 }
  0x1d   : > { %p756_p1 = pneg %p755_p5 }
  0x1f   : > { %p763_p0 = pnand %p762_p8, %p756_p1 }
  0x21   : > { %766 = shalt.err (!%p763_p0)
}
  0x22   : > { %s1202_s0 = sld [smem:[#allocation15_spill]]  ;;  %s1217_s7 = smov (%p29_p6, %s28_s7), 0 }
  0x23   : > { %1203 = sst [smem:[#allocation14_spill]] %s1217_s7  ;;  %s209_s12 = sand.u32 1, %s925_s17  }
  0x24   : > { %s87_s13 = ssub.s32 %s933_s19, %s1217_s7  ;;  %s606_s14 = sshll.u32 %s209_s12, 5 }
  0x25   : > { %p88_p8 = scmp.eq.s32.totalorder %s87_s13, 0  ;;  %s607_s22 = sshll.u32 %s933_s19, 7 }
  0x26   : > { %s211_s24 = scalar_lea.vmem [#allocation7], %s606_s14  ;;  %p769_p9 = pneg %p1046_p4 }
  0x27   : > { %s217_s29 = sshll.u32 %s211_s24, 4  ;;  %s940_s13 = smov [#allocation7]   ;;  %s218_s29 = int_to_ptr.vmem [resolvable:$true] %s217_s29 }
  0x28   : > { %665 = dma.hbm_to_vmem [thread:$0]  (!%p1052_p2), %s1202_s0, 128, %s184_s30, [#allocation3]  }
  0x29   : > { %s1079_s9 = scalar_select %p88_p8, %s925_s17, %s90_s23  }
  0x2a   : > { %s216_s30 = scalar_lea.hbm %s1186_s2, %s607_s22  ;;  %s1086_s0 = scalar_lea.sflag [#allocation3], %s207_s8 }
  0x2b   : > { %s780_s7 = scalar_lea.vmem %s218_s29, 512  ;;  %s785_s14 = sshll.u32 %s940_s13, 4  ;;  %s786_s14 = int_to_ptr.vmem [resolvable:$false] %s785_s14 }
  0x2c   : > { %p781_p12 = scmp.ne.s32.totalorder %s218_s29, %s780_s7  ;;  %s787_s23 = scalar_lea.vmem %s786_s14, 1024 }
  0x2d   : > { %p788_p5 = scmp.lt.s32.totalorder %s218_s29, %s786_s14  ;;  %p789_p1 = scmp.lt.s32.totalorder %s787_s23, %s780_s7 }
  0x2e   : > { %p783_p6 = pnand %p781_p12, %p769_p9 }
  0x2f   : > { %p790_p0 = por %p789_p1, %p788_p5 }
  0x30   : > { %p784_p11 = pneg %p783_p6 }
  0x32   : > { %p791_p8 = pnand %p790_p0, %p784_p11 }
  0x34   : > { %794 = shalt.err (!%p791_p8)
}
  0x35   : > { %s1191_s24 = smov 256   ;;  %s1192_s8 = smov 128  }
  0x36   : > { %s1193_s10 = smov 8   ;;  %s944_s11 = smov [#allocation5]  }
  0x37   : > { %672 = dma.hbm_to_vmem [thread:$0]  (!%p1046_p4), %s216_s30, 512, %s218_s29, %s1086_s0, %s1191_s24, %s1192_s8, %s1193_s10  }
  0x38   : > { %s196_s13 = sshll.u32 %s944_s11, 4  ;;  %s608_s14 = sshll.u32 %s209_s12, 4  ;;  %s197_s13 = int_to_ptr.vmem [resolvable:$true] %s196_s13 }
  0x39   : > { %s806_s7 = scalar_lea.vmem %s197_s13, 128  ;;  %p814_p5 = scmp.lt.s32.totalorder %s197_s13, %s197_s13 }
  0x3a   : > { %p807_p12 = scmp.ne.s32.totalorder %s197_s13, %s806_s7  ;;  %p815_p1 = scmp.lt.s32.totalorder %s806_s7, %s806_s7 }
  0x3c   : > { %p809_p6 = pnand %p807_p12, %p743_p10  ;;  %p816_p0 = por %p815_p1, %p814_p5 }
  0x3e   : > { %p810_p11 = pneg %p809_p6 }
  0x40   : > { %p817_p8 = pnand %p816_p0, %p810_p11 }
  0x42   : > { %820 = shalt.err (!%p817_p8)
}
  0x43   : > { %668 = dma.hbm_to_vmem [thread:$0]  (!%p1052_p2), %s1185_s1, 128, %s197_s13, [#allocation6]  }
  0x44   : > { %s236_s11 = scalar_lea.hbm %s1187_s3, %s607_s22  ;;  %s231_s24 = scalar_lea.vmem [#allocation8], %s608_s14 }
  0x45   : > { %s237_s8 = sshll.u32 %s231_s24, 4  ;;  %s945_s6 = smov [#allocation8]   ;;  %s238_s8 = int_to_ptr.vmem [resolvable:$true] %s237_s8 }
  0x46   : > { %s834_s7 = scalar_lea.vmem %s238_s8, 256  ;;  %s839_s10 = sshll.u32 %s945_s6, 4  ;;  %s840_s10 = int_to_ptr.vmem [resolvable:$false] %s839_s10 }
  0x47   : > { %p835_p10 = scmp.ne.s32.totalorder %s238_s8, %s834_s7  ;;  %s841_s23 = scalar_lea.vmem %s840_s10, 512 }
  0x48   : > { %p842_p11 = scmp.lt.s32.totalorder %s238_s8, %s840_s10  ;;  %p843_p2 = scmp.lt.s32.totalorder %s841_s23, %s834_s7 }
  0x49   : > { %p837_p12 = pnand %p835_p10, %p769_p9 }
  0x4a   : > { %p844_p5 = por %p843_p2, %p842_p11 }
  0x4b   : > { %p838_p6 = pneg %p837_p12 }
  0x4d   : > { %p845_p1 = pnand %p844_p5, %p838_p6 }
  0x4f   : > { %848 = shalt.err (!%p845_p1)
}
  0x50   : > { %s1204_s22 = smov 8   ;;  %s1205_s24 = smov 128  }
  0x51   : > { %s1206_s13 = smov 256   ;;  %249 = sbr.rel (%p1037_p13) target bundleno = 313 (0x139), region = 36 }
  0x52   : > { %675 = dma.hbm_to_vmem [thread:$0]  (!%p1046_p4), %s236_s11, 256, %s238_s8, %s1086_s0, %s1206_s13, %s1205_s24, %s1204_s22  }
  0x56   : > { %900 = dma.done.wait (%p104_p3), [#allocation3], 128  }
  0x57   : > { %902 = vsyncadd (%p104_p3), [#allocation3], 4294967168 }
  0x58   : > { %904 = dma.done.wait (%p104_p3), [#allocation6], 128  }
  0x59   : > { %906 = vsyncadd (%p104_p3), [#allocation6], 4294967168  ;;  %s259_s5 = sand.u32 1, %s1005_s21   ;;  %s1135_s0 = sand.u32 1, %s921_s16  }
  0x5a   : > { %s613_s28 = sshll.u32 %s1135_s0, 5  ;;  %s260_s8 = scalar_lea.sflag [#allocation3], %s259_s5 }
  0x5b   : > { %s263_s10 = scalar_lea.vmem [#allocation7], %s613_s28 }
  0x5c   : > { %908 = dma.done.wait (%p1022_p7), %s260_s8, 768  }
  0x5d   : > { %910 = vsyncadd (%p1022_p7), %s260_s8, 4294966528  ;;  %v946_v0 = vmov 0.0   ;;  %s614_s14 = sshll.u32 %s1135_s0, 4  ;;  %vm947_vm0 = vmmov 0   ;;  %v305_v1 = vld [vmem:[%s263_s10 + $0x18] sm:$0xff]  ;;  %v304_v2 = vld [vmem:[%s263_s10 + $0x10] sm:$0xff] }
  0x5e   : > { %630 = vmatprep.subr.mxu0 %v946_v0  ;;  %641 = vmatprep.subr.mxu1 %v946_v0  ;;  %s272_s21 = scalar_lea.vmem [#allocation8], %s614_s14  ;;  %v309_v5 = vld [vmem:[#allocation5] sm:$0xff]  ;;  %vm384_vm1 = vcmask 130048   ;;  %v303_v6 = vld [vmem:[%s263_s10 + $0x8] sm:$0xff]  ;;  %v302_v7 = vld [vmem:[%s263_s10] sm:$0xff]  ;;  %vm310_vm2 = vcmask 261120  }
  0x5f   : > { %645 = vmatprep.mubr.msk.f32.mxu1 %vm947_vm0, %v946_v0  ;;  %638 = vmatprep.mubr.msk.f32.mxu0 %vm947_vm0, %v946_v0  ;;  %v307_v3 = vld [vmem:[%s272_s21 + $0x8] sm:$0xff]  ;;  %v306_v4 = vld [vmem:[%s272_s21] sm:$0xff]  ;;  %s615_s25 = sshll.u32 %s1135_s0, 3  ;;  %s619_s29 = sshll.u32 %s929_s18, 7 }
  0x60   : > { %631 = vmatpush3.msra.mxu0 %v305_v1  ;;  %642 = vmatpush3.msra.mxu1 %v307_v3  ;;  %v308_v8 = vld [vmem:[#allocation2] sm:$0xff]  ;;  %s301_s12 = scalar_lea.vmem [#allocation9], %s615_s25  ;;  %s475_s6 = scalar_lea.hbm %s1188_s4, %s619_s29 }
  0x61   : > { %632 = vmatprep.subr.mxu0 %v946_v0  ;;  %643 = vmatprep.subr.mxu1 %v946_v0  ;;  %s477_s30 = sshll.u32 %s301_s12, 4  ;;  %s462_s23 = scalar_lea.sflag [#allocation4], %s1135_s0  ;;  %s478_s30 = int_to_ptr.vmem [resolvable:$true] %s477_s30 }
  0x62   : > { %633 = vmatpush3.msra.mxu0 %v304_v2  ;;  %644 = vmatpush3.msra.mxu1 %v306_v4  ;;  %s849_s22 = scalar_lea.vmem %s478_s30, 128  ;;  %p1207_p7 = scmp.ne.s32.totalorder %s1197_s26, 0 }
  0x63   : > { %634 = vmatprep.subr.mxu0 %v946_v0  ;;  %646 = vmatmul.mubr.msk.f32.vlgmr.msra.gmra.mxu1 %vm384_vm1, %v309_v5  ;;  %p850_p3 = scmp.ne.s32.totalorder %s478_s30, %s849_s22  ;;  %s948_s24 = smov [#allocation9]  }
  0x64   : > { %635 = vmatpush3.msra.mxu0 %v303_v6  ;;  %s853_s13 = sshll.u32 %s948_s24, 4  ;;  %s854_s13 = int_to_ptr.vmem [resolvable:$false] %s853_s13 }
  0x65   : > { %636 = vmatprep.subr.mxu0 %v946_v0  ;;  %p851_p13 = pnand %p850_p3, %p1207_p7  ;;  %s855_s18 = scalar_lea.vmem %s854_s13, 256 }
  0x66   : > { %637 = vmatpush3.msra.mxu0 %v302_v7  ;;  %p856_p9 = scmp.lt.s32.totalorder %s478_s30, %s854_s13  ;;  %p857_p0 = scmp.lt.s32.totalorder %s855_s18, %s849_s22 }
  0x67   : > { %639 = vmatmul.mubr.msk.f32.vlgmr.msra.gmra.mxu0 %vm310_vm2, %v308_v8  ;;  %p852_p4 = pneg %p851_p13 }
  0x68   : > { %p858_p8 = por %p857_p0, %p856_p9 }
  0x6a   : > { %p859_p10 = pnand %p858_p8, %p852_p4 }
 0x123   : > { %v454_v9 = vpop.f32.mrf.mxu1 }
 0x125   : > { %v647_v10 = vpop.f32.mrf.mxu1 }
 0x127   : > { %v380_v11 = vpop.f32.mrf.mxu0 }
 0x128   : > { %v458_v12 = vmul.f32 %v454_v9, %v380_v11 }
 0x129   : > { %v640_v13 = vpop.f32.mrf.mxu0 }
 0x12a   : > { %v459_v14 = vmul.f32 0.0625, %v458_v12 }
 0x12c   : > { %460 = vst [vmem:[%s301_s12] sm:$0xff] %v459_v14 }
 0x12d   : > { %862 = shalt.err (!%p859_p10)
}
 0x12e   : > { %s863_s5 = scalar_lea.hbm %s475_s6, 128  ;;  %s867_s8 = scalar_lea.hbm %s1188_s4, 256 }
 0x12f   : > { %p864_p12 = scmp.ne.s32.totalorder %s475_s6, %s863_s5  ;;  %p868_p2 = scmp.lt.s32.totalorder %s475_s6, %s1188_s4 }
 0x130   : > { %p869_p5 = scmp.lt.s32.totalorder %s867_s8, %s863_s5 }
 0x131   : > { %p865_p6 = pnand %p864_p12, %p1207_p7 }
 0x132   : > { %p870_p1 = por %p869_p5, %p868_p2 }
 0x133   : > { %p866_p11 = pneg %p865_p6 }
 0x135   : > { %p871_p3 = pnand %p870_p1, %p866_p11 }
 0x137   : > { %874 = shalt.err (!%p871_p3)
}
 0x138   : > { %660 = dma.vmem_to_hbm [thread:$0]  (%p1207_p7), %s478_s30, 128, %s475_s6, %s462_s23  }
 0x139 PF: > { %s489_s21 = sand.u32 1, %s917_s15   ;;  %p1208_p13 = scmp.ne.s32.totalorder %s1198_s27, 0 }
 0x13a   : > { %p1209_p4 = scmp.ge.s32.totalorder %s937_s20, 2  ;;  %s490_s25 = scalar_lea.sflag [#allocation4], %s489_s21 }
 0x13c   : > { %p677_p9 = pnand %p1209_p4, %p1208_p13 }
 0x13e   : > { %p678_p0 = pneg %p677_p9 }
 0x140   : > { %912 = dma.done.wait (%p678_p0), %s490_s25, 128  }
 0x141   : > { %914 = vsyncadd (%p678_p0), %s490_s25, 4294967168  ;;  %s19_s20 = sadd.s32 1, %s937_s20   ;;  %s1210_s26 = sld [smem:[#allocation14_spill]] }
 0x142   : > { %p16_p8 = scmp.ge.s32.totalorder %s19_s20, 4   ;;  %s1211_s15 = smov %s921_s16 }
 0x143   : > { %s1212_s16 = smov %s925_s17  ;;  %s1213_s17 = smov %s1079_s9 }
 0x144   : > { %s1214_s18 = smov %s933_s19  ;;  %18 = sbr.rel (!%p16_p8) target bundleno = 8 (0x8), region = 101 }
 0x147   : > { %s1215_s19 = smov %s1210_s26 }
 0x149   :  { %495 = vsyncpa [#allocation3], 1 }
 0x14a   :  { %497 = vsyncpa [#allocation3 + $0x1], 1 }
 0x14b   :  { %498 = vsyncpa [#allocation6], 1 }
 0x14c   :  { %499 = vsyncpa [#allocation4], 1 }
 0x14d   :  { %501 = vsyncpa [#allocation4 + $0x1], 1 }

</bundles_post_ra>
